<compile_context>
chip_gen: v5e
topology: v5e:2x2
jax: 0.10.0
libtpu: 0.0.40
codegen_flags: <defaults>
</compile_context>

<pallas_src>
import functools
import math

import jax
import jax.numpy as jnp
from jax.experimental import pallas as pl
from jax.experimental.pallas import tpu as pltpu

_LN_EPS = 1e-5                    # torch.nn.LayerNorm default eps
_INV_SQRT2 = 1.0 / math.sqrt(2.0)
_NEG_BIG = -1e30                  # finite "−inf" (matches torch mask constant)


def _round_up(n, m):
    return ((n + m - 1) // m) * m


def _cdiv(a, b):
    return (a + b - 1) // b


def _layer_norm_f32(x, gamma, beta):
    """LayerNorm over the last axis in f32. gamma/beta are (1, C)."""
    mu = jnp.mean(x, axis=-1, keepdims=True)
    xc = x - mu
    var = jnp.mean(xc * xc, axis=-1, keepdims=True)
    return xc * jax.lax.rsqrt(var + _LN_EPS) * gamma + beta


# ---------------------------------------------------------------------------
# Kernel A: fused LayerNorm1 + single fused QKV projection for one row tile.
# ---------------------------------------------------------------------------
def _ln_qkv_kernel(x_ref, g1_ref, b1_ref, w_ref, b_ref,
                   q_ref, k_ref, v_ref, *, cqk):
    x = x_ref[...].astype(jnp.float32)
    xn = _layer_norm_f32(x, g1_ref[...].astype(jnp.float32),
                         b1_ref[...].astype(jnp.float32))
    xn = xn.astype(w_ref.dtype)           # bf16 weights -> bf16 MXU operands
    qkv = jnp.dot(xn, w_ref[...], preferred_element_type=jnp.float32)
    qkv = qkv + b_ref[...]
    q_ref[...] = qkv[:, :cqk].astype(q_ref.dtype)          # already pre-scaled
    k_ref[...] = qkv[:, cqk:2 * cqk].astype(k_ref.dtype)
    v_ref[...] = qkv[:, 2 * cqk:].astype(v_ref.dtype)


# ---------------------------------------------------------------------------
# Kernel B: per-batch flash-style attention.  grid = (B, n_kv); KV axis is
# "arbitrary"; m/l/acc live in f32 VMEM scratch across KV steps.  Heads are a
# static in-kernel loop over lane-column slices of the fused Q/K/V blocks.
# ---------------------------------------------------------------------------
def _flash_attn_kernel(q_ref, k_ref, v_ref, o_ref, m_ref, l_ref, acc_ref, *,
                       num_heads, dq, dv, kv_len, tile_kv, s_q, masked):
    j = pl.program_id(1)

    @pl.when(j == 0)
    def _init():
        m_ref[...] = jnp.full_like(m_ref, _NEG_BIG)
        l_ref[...] = jnp.zeros_like(l_ref)
        acc_ref[...] = jnp.zeros_like(acc_ref)

    if masked:
        col = (jax.lax.broadcasted_iota(jnp.int32, (s_q, tile_kv), 1)
               + j * tile_kv)
        kv_valid = col < kv_len

    for h in range(num_heads):
        # Native-dtype operands straight into the MXU (f32 accumulation).
        q = q_ref[:, h * dq:(h + 1) * dq]          # [S_q, Dq]  (pre-scaled)
        k = k_ref[:, h * dq:(h + 1) * dq]          # [tile_kv, Dq]
        v = v_ref[:, h * dv:(h + 1) * dv]          # [tile_kv, Dv]
        s = jax.lax.dot_general(q, k, (((1,), (1,)), ((), ())),
                                preferred_element_type=jnp.float32)
        if masked:
            s = jnp.where(kv_valid, s, _NEG_BIG)   # mask padded KV columns
        m_prev = m_ref[:, h:h + 1]
        m_new = jnp.maximum(m_prev, jnp.max(s, axis=-1, keepdims=True))
        alpha = jnp.exp(m_prev - m_new)
        e = jnp.exp(s - m_new)
        l_ref[:, h:h + 1] = (alpha * l_ref[:, h:h + 1]
                             + jnp.sum(e, axis=-1, keepdims=True))
        acc_ref[:, h * dv:(h + 1) * dv] = (
            alpha * acc_ref[:, h * dv:(h + 1) * dv]
            + jnp.dot(e.astype(v.dtype), v, preferred_element_type=jnp.float32))
        m_ref[:, h:h + 1] = m_new

    @pl.when(j == pl.num_programs(1) - 1)
    def _finalize():
        # Deferred normalisation: one reciprocal per (row, head) on the EUP,
        # applied to the [S_q, Dv] numerator (not the [S_q, S_kv] weights).
        for h in range(num_heads):
            inv = pl.reciprocal(l_ref[:, h:h + 1], approx=True)
            o_ref[:, h * dv:(h + 1) * dv] = (
                acc_ref[:, h * dv:(h + 1) * dv] * inv).astype(o_ref.dtype)


# ---------------------------------------------------------------------------
# Kernel C: final projection + residual + LayerNorm2 + MLP + residual.
# TODO(synk): for very large widening factors on v7x, chunk the MLP hidden dim
# with an f32 accumulator to bound the [tile_m, F] intermediate.
# ---------------------------------------------------------------------------
def _final_mlp_kernel(ctx_ref, x_ref, wf_ref, bf_ref, g2_ref, b2_ref,
                      w1_ref, fb1_ref, w2_ref, fb2_ref, o_ref):
    x = x_ref[...].astype(jnp.float32)
    ctx = ctx_ref[...].astype(wf_ref.dtype)
    a = jnp.dot(ctx, wf_ref[...], preferred_element_type=jnp.float32)
    a = a + bf_ref[...]
    x1 = x + a                                           # residual 1
    x1n = _layer_norm_f32(x1, g2_ref[...].astype(jnp.float32),
                          b2_ref[...].astype(jnp.float32))
    h = jnp.dot(x1n.astype(w1_ref.dtype), w1_ref[...],
                preferred_element_type=jnp.float32) + fb1_ref[...]
    h = 0.5 * h * (1.0 + jax.lax.erf(h * _INV_SQRT2))    # exact (erf) GELU
    y = jnp.dot(h.astype(w2_ref.dtype), w2_ref[...],
                preferred_element_type=jnp.float32) + fb2_ref[...]
    o_ref[...] = (x1 + y).astype(o_ref.dtype)            # MLP residual


def self_attention_pallas(x, params, *, num_heads, tile_m=256, tile_kv=512,
                          vmem_limit_bytes=None, single_buffer_weights=False):
    """Forward pass of the Perceiver-IO SelfAttention block in Pallas.

    x: [B, S, C].  params holds linear weights stored as [in, out]
    (transposed vs. torch nn.Linear), their biases, and LayerNorm affines.
    """
    B, S, C = x.shape
    wq, wk, wv = params["wq"], params["wk"], params["wv"]
    wf, w1, w2 = params["wf"], params["w1"], params["w2"]
    Cqk, Cv = wq.shape[1], wv.shape[1]
    Cout, F = wf.shape[1], w1.shape[1]
    assert Cqk % num_heads == 0 and Cv % num_heads == 0
    assert Cout == C, "residual connection requires output_channels == in_channels"
    Dq, Dv = Cqk // num_heads, Cv // num_heads
    Cqkv = 2 * Cqk + Cv
    dtype = x.dtype
    itemsize = dtype.itemsize

    # ---- sequence padding so per-batch KV tiles are (8,128)-legal ----------
    tile_kv = max(8, (tile_kv // 8) * 8)
    S_pad = _round_up(S, 8)
    if S_pad > tile_kv:
        S_pad = _round_up(S, tile_kv)
    else:
        tile_kv = S_pad
    n_kv = S_pad // tile_kv
    masked = S_pad != S

    x3 = x
    if masked:
        x3 = jnp.pad(x, ((0, 0), (0, S_pad - S), (0, 0)))

    # ---- flatten rows; row tile for kernels A / C ---------------------------
    N = B * S_pad
    tile_m = max(8, (tile_m // 8) * 8)
    # keep >= 2 row tiles when possible so v7x's two TensorCores both get work
    tile_m = min(tile_m, _round_up(_cdiv(N, 2), 8))
    Np = _round_up(N, tile_m)
    grid_rows = Np // tile_m

    x2d = x3.reshape(N, C)
    if Np != N:
        x2d = jnp.pad(x2d, ((0, Np - N), (0, 0)))

    # ---- fold 1/sqrt(Dq) into the Q projection; concatenate QKV weights -----
    scale = 1.0 / math.sqrt(Dq)
    wq_s = (wq.astype(jnp.float32) * scale).astype(wq.dtype)
    bq_s = (params["bq"].astype(jnp.float32) * scale).astype(params["bq"].dtype)
    w_qkv = jnp.concatenate([wq_s, wk, wv], axis=1)            # [C, Cqkv]
    b_qkv = jnp.concatenate([bq_s, params["bk"], params["bv"]]).reshape(1, Cqkv)

    def cparams(sem):
        return pltpu.CompilerParams(dimension_semantics=sem,
                                    vmem_limit_bytes=vmem_limit_bytes)

    def _full(shape):
        # Grid-invariant block (weights / biases): fetched once, VMEM-resident.
        idx_map = lambda *_: (0,) * len(shape)
        if single_buffer_weights:      # v7x VMEM-headroom knob (off by default)
            return pl.BlockSpec(shape, idx_map, pipeline_mode=pl.Buffered(1))
        return pl.BlockSpec(shape, idx_map)

    # ---- Kernel A: LayerNorm1 + fused QKV projection ------------------------
    cost_a = pl.CostEstimate(
        flops=int(2 * Np * C * Cqkv + 10 * Np * C),
        transcendentals=int(Np),
        bytes_accessed=int(itemsize * (Np * (C + Cqkv) + C * Cqkv
                                       + 2 * C + Cqkv)))
    q2d, k2d, v2d = pl.pallas_call(
        functools.partial(_ln_qkv_kernel, cqk=Cqk),
        out_shape=(jax.ShapeDtypeStruct((Np, Cqk), dtype),
                   jax.ShapeDtypeStruct((Np, Cqk), dtype),
                   jax.ShapeDtypeStruct((Np, Cv), dtype)),
        grid_spec=pltpu.PrefetchScalarGridSpec(
            num_scalar_prefetch=0,
            grid=(grid_rows,),
            in_specs=[
                pl.BlockSpec((tile_m, C), lambda i: (i, 0)),     # x rows
                _full((1, C)), _full((1, C)),                    # ln1 gamma/beta
                _full((C, Cqkv)), _full((1, Cqkv)),              # Wqkv, bqkv
            ],
            out_specs=(pl.BlockSpec((tile_m, Cqk), lambda i: (i, 0)),
                       pl.BlockSpec((tile_m, Cqk), lambda i: (i, 0)),
                       pl.BlockSpec((tile_m, Cv), lambda i: (i, 0))),
        ),
        compiler_params=cparams(("parallel",)),
        cost_estimate=cost_a,
    )(x2d,
      params["ln1_g"].reshape(1, C), params["ln1_b"].reshape(1, C),
      w_qkv, b_qkv)

    # ---- Kernel B: flash attention over (batch, kv-block) grid --------------
    # Output rows [N, Np) are never written (uninitialised); they stay
    # row-local through kernel C and are sliced off before returning.
    cost_b = pl.CostEstimate(
        flops=int(2 * B * num_heads * S_pad * S_pad * (Dq + Dv)
                  + 8 * B * num_heads * S_pad * S_pad),
        transcendentals=int(2 * B * num_heads * S_pad * S_pad),
        bytes_accessed=int(itemsize * N * (2 * Cqk + 2 * Cv)))
    ctx2d = pl.pallas_call(
        functools.partial(_flash_attn_kernel, num_heads=num_heads, dq=Dq, dv=Dv,
                          kv_len=S, tile_kv=tile_kv, s_q=S_pad, masked=masked),
        out_shape=jax.ShapeDtypeStruct((Np, Cv), dtype),
        grid_spec=pltpu.PrefetchScalarGridSpec(
            num_scalar_prefetch=0,
            grid=(B, n_kv),
            in_specs=[
                pl.BlockSpec((S_pad, Cqk), lambda b, j: (b, 0)),             # Q
                pl.BlockSpec((tile_kv, Cqk), lambda b, j: (b * n_kv + j, 0)),  # K
                pl.BlockSpec((tile_kv, Cv), lambda b, j: (b * n_kv + j, 0)),   # V
            ],
            out_specs=pl.BlockSpec((S_pad, Cv), lambda b, j: (b, 0)),
            scratch_shapes=[pltpu.VMEM((S_pad, num_heads), jnp.float32),  # m
                            pltpu.VMEM((S_pad, num_heads), jnp.float32),  # l
                            pltpu.VMEM((S_pad, Cv), jnp.float32)],        # acc
        ),
        compiler_params=cparams(("parallel", "arbitrary")),
        cost_estimate=cost_b,
    )(q2d, k2d, v2d)

    # ---- Kernel C: final proj + residual + LayerNorm2 + MLP + residual ------
    cost_c = pl.CostEstimate(
        flops=int(2 * Np * (Cv * Cout + Cout * F + F * Cout)
                  + 20 * Np * Cout + 8 * Np * F),
        transcendentals=int(Np * F + Np),
        bytes_accessed=int(itemsize * (Np * (Cv + C + Cout)
                                       + Cv * Cout + 2 * Cout * F
                                       + 3 * Cout + F + 2 * C)))
    out2d = pl.pallas_call(
        _final_mlp_kernel,
        out_shape=jax.ShapeDtypeStruct((Np, Cout), dtype),
        grid_spec=pltpu.PrefetchScalarGridSpec(
            num_scalar_prefetch=0,
            grid=(grid_rows,),
            in_specs=[
                pl.BlockSpec((tile_m, Cv), lambda i: (i, 0)),    # attn context
                pl.BlockSpec((tile_m, C), lambda i: (i, 0)),     # x (residual)
                _full((Cv, Cout)), _full((1, Cout)),             # Wf, bf
                _full((1, Cout)), _full((1, Cout)),              # ln2 gamma/beta
                _full((Cout, F)), _full((1, F)),                 # fc1
                _full((F, Cout)), _full((1, Cout)),              # fc2
            ],
            out_specs=pl.BlockSpec((tile_m, Cout), lambda i: (i, 0)),
        ),
        compiler_params=cparams(("parallel",)),
        cost_estimate=cost_c,
    )(ctx2d, x2d,
      wf, params["bf"].reshape(1, Cout),
      params["ln2_g"].reshape(1, Cout), params["ln2_b"].reshape(1, Cout),
      w1, params["b1"].reshape(1, F),
      w2, params["b2"].reshape(1, Cout))

    out = out2d[:N].reshape(B, S_pad, Cout)
    if masked:
        out = out[:, :S, :]
    return out


# ---------------------------------------------------------------------------
# Pure-JAX reference (same math as the torch module's forward).
# ---------------------------------------------------------------------------
def self_attention_ref(x, p, *, num_heads):
    hp = jax.lax.Precision.HIGHEST

    def ln(z, g, b):
        mu = jnp.mean(z, axis=-1, keepdims=True)
        var = jnp.mean((z - mu) ** 2, axis=-1, keepdims=True)
        return (z - mu) * jax.lax.rsqrt(var + _LN_EPS) * g + b

    xn = ln(x, p["ln1_g"], p["ln1_b"])
    q = jnp.einsum("bsc,cd->bsd", xn, p["wq"], precision=hp) + p["bq"]
    k = jnp.einsum("bsc,cd->bsd", xn, p["wk"], precision=hp) + p["bk"]
    v = jnp.einsum("bsc,cd->bsd", xn, p["wv"], precision=hp) + p["bv"]
    B, S, Cqk = q.shape
    Cv = v.shape[-1]
    Dq, Dv = Cqk // num_heads, Cv // num_heads
    q = q.reshape(B, S, num_heads, Dq).transpose(0, 2, 1, 3)
    k = k.reshape(B, S, num_heads, Dq).transpose(0, 2, 1, 3)
    v = v.reshape(B, S, num_heads, Dv).transpose(0, 2, 1, 3)
    att = jnp.einsum("bhqd,bhkd->bhqk", q, k, precision=hp) / math.sqrt(Dq)
    att = jax.nn.softmax(att, axis=-1)
    ctx = jnp.einsum("bhqk,bhkd->bhqd", att, v, precision=hp)
    ctx = ctx.transpose(0, 2, 1, 3).reshape(B, S, Cv)
    a = jnp.einsum("bsc,cd->bsd", ctx, p["wf"], precision=hp) + p["bf"]
    x1 = x + a
    x1n = ln(x1, p["ln2_g"], p["ln2_b"])
    h = jnp.einsum("bsc,cf->bsf", x1n, p["w1"], precision=hp) + p["b1"]
    h = 0.5 * h * (1.0 + jax.lax.erf(h * _INV_SQRT2))
    y = x1 + jnp.einsum("bsf,fc->bsc", h, p["w2"], precision=hp) + p["b2"]
    return y


if __name__ == "__main__":
    # Small, lane-dense config consistent with module defaults:
    # in_channels=128, num_heads=8 -> head_dim=16, widening_factor=4 ->
    # hidden=512, qk_channels=v_channels=in_channels.
    batch, seq = 2, 16
    in_channels = 128
    num_heads = 8
    widening_factor = 4
    qk_channels = in_channels
    v_channels = qk_channels
    out_channels = v_channels
    hidden = widening_factor * v_channels

    key = jax.random.PRNGKey(0)
    ks = jax.random.split(key, 17)

    def trunc_vs(k, shape, fan_in, scale=1.0):
        # variance_scaling_(scale, 'fan_in', 'truncated_normal') as in the
        # torch module (std corrected for +/-2 sigma truncation).
        std = math.sqrt(scale / fan_in) / 0.87962566103423978
        return std * jax.random.truncated_normal(k, -2.0, 2.0, shape, jnp.float32)

    x = jax.random.normal(ks[0], (batch, seq, in_channels), jnp.float32)

    # Weights stored as [in, out] (transposed vs. torch nn.Linear).  Biases and
    # LayerNorm affines are randomized (torch initializes them to 0 / 1) so the
    # kernel's bias / affine handling is actually exercised by the check.
    params = dict(
        ln1_g=1.0 + 0.1 * jax.random.normal(ks[1], (in_channels,), jnp.float32),
        ln1_b=0.1 * jax.random.normal(ks[2], (in_channels,), jnp.float32),
        wq=trunc_vs(ks[3], (in_channels, qk_channels), in_channels),
        bq=0.05 * jax.random.normal(ks[4], (qk_channels,), jnp.float32),
        wk=trunc_vs(ks[5], (in_channels, qk_channels), in_channels),
        bk=0.05 * jax.random.normal(ks[6], (qk_channels,), jnp.float32),
        wv=trunc_vs(ks[7], (in_channels, v_channels), in_channels),
        bv=0.05 * jax.random.normal(ks[8], (v_channels,), jnp.float32),
        wf=trunc_vs(ks[9], (v_channels, out_channels), v_channels),
        bf=0.05 * jax.random.normal(ks[10], (out_channels,), jnp.float32),
        ln2_g=1.0 + 0.1 * jax.random.normal(ks[11], (v_channels,), jnp.float32),
        ln2_b=0.1 * jax.random.normal(ks[12], (v_channels,), jnp.float32),
        w1=trunc_vs(ks[13], (v_channels, hidden), v_channels),
        b1=0.05 * jax.random.normal(ks[14], (hidden,), jnp.float32),
        w2=trunc_vs(ks[15], (hidden, out_channels), hidden),
        b2=0.05 * jax.random.normal(ks[16], (out_channels,), jnp.float32),
    )

    y = self_attention_pallas(x, params, num_heads=num_heads)
    y = jax.block_until_ready(y)

    y_ref = self_attention_ref(x, params, num_heads=num_heads)
    err = float(jnp.max(jnp.abs(y - y_ref)))
    assert y.shape == (batch, seq, out_channels)
    # 5e-3 tolerance (outputs are O(1)): covers the EUP approx reciprocal used
    # for the deferred softmax normalisation plus f32-vs-HIGHEST matmul drift.
    assert err < 5e-3, f"max abs error vs reference: {err}"
    print("KERNEL_OK")
</pallas_src>

<mosaic_0001>
module attributes {stable_mosaic.version = 11 : i64} {
  func.func @_ln_qkv_kernel(%arg0: i32, %arg1: memref<16x128xf32, #tpu.memory_space<vmem>>, %arg2: memref<1x128xf32, #tpu.memory_space<vmem>>, %arg3: memref<1x128xf32, #tpu.memory_space<vmem>>, %arg4: memref<128x384xf32, #tpu.memory_space<vmem>>, %arg5: memref<1x384xf32, #tpu.memory_space<vmem>>, %arg6: memref<16x128xf32, #tpu.memory_space<vmem>>, %arg7: memref<16x128xf32, #tpu.memory_space<vmem>>, %arg8: memref<16x128xf32, #tpu.memory_space<vmem>>) attributes {dimension_semantics = [#tpu.dimension_semantics<parallel>], iteration_bounds = array<i64: 2>, scalar_prefetch = 0 : i64, scratch_operands = 0 : i64, tpu.core_type = #tpu.core_type<tc>, window_params = [{transform_indices = @transform_0, window_bounds = array<i64: 16, 128>}, {pipeline_mode = #tpu.pipeline_mode<synchronous>, transform_indices = @transform_1, window_bounds = array<i64: 1, 128>}, {pipeline_mode = #tpu.pipeline_mode<synchronous>, transform_indices = @transform_2, window_bounds = array<i64: 1, 128>}, {pipeline_mode = #tpu.pipeline_mode<synchronous>, transform_indices = @transform_3, window_bounds = array<i64: 128, 384>}, {pipeline_mode = #tpu.pipeline_mode<synchronous>, transform_indices = @transform_4, window_bounds = array<i64: 1, 384>}, {transform_indices = @transform_5, window_bounds = array<i64: 16, 128>}, {transform_indices = @transform_6, window_bounds = array<i64: 16, 128>}, {transform_indices = @transform_7, window_bounds = array<i64: 16, 128>}]} {
    %c0 = arith.constant 0 : index
    %c0_0 = arith.constant 0 : index
    %0 = vector.load %arg1[%c0, %c0_0] : memref<16x128xf32, #tpu.memory_space<vmem>>, vector<16x128xf32>
    %c0_1 = arith.constant 0 : index
    %c0_2 = arith.constant 0 : index
    %1 = vector.load %arg2[%c0_1, %c0_2] : memref<1x128xf32, #tpu.memory_space<vmem>>, vector<1x128xf32>
    %c0_3 = arith.constant 0 : index
    %c0_4 = arith.constant 0 : index
    %2 = vector.load %arg3[%c0_3, %c0_4] : memref<1x128xf32, #tpu.memory_space<vmem>>, vector<1x128xf32>
    %cst = arith.constant dense<0.000000e+00> : vector<16xf32>
    %3 = vector.multi_reduction <add>, %0, %cst [1] : vector<16x128xf32> to vector<16xf32>
    %4 = vector.shape_cast %3 : vector<16xf32> to vector<16x1xf32>
    %cst_5 = arith.constant 1.280000e+02 : f32
    %5 = vector.broadcast %cst_5 : f32 to vector<16x1xf32>
    %6 = arith.divf %4, %5 : vector<16x1xf32>
    %7 = vector.broadcast %6 : vector<16x1xf32> to vector<16x128xf32>
    %8 = arith.subf %0, %7 : vector<16x128xf32>
    %9 = arith.mulf %8, %8 : vector<16x128xf32>
    %cst_6 = arith.constant dense<0.000000e+00> : vector<16xf32>
    %10 = vector.multi_reduction <add>, %9, %cst_6 [1] : vector<16x128xf32> to vector<16xf32>
    %11 = vector.shape_cast %10 : vector<16xf32> to vector<16x1xf32>
    %cst_7 = arith.constant 1.280000e+02 : f32
    %12 = vector.broadcast %cst_7 : f32 to vector<16x1xf32>
    %13 = arith.divf %11, %12 : vector<16x1xf32>
    %cst_8 = arith.constant 9.99999974E-6 : f32
    %14 = vector.broadcast %cst_8 : f32 to vector<16x1xf32>
    %15 = arith.addf %13, %14 : vector<16x1xf32>
    %16 = math.rsqrt %15 : vector<16x1xf32>
    %17 = vector.broadcast %16 : vector<16x1xf32> to vector<16x128xf32>
    %18 = arith.mulf %8, %17 : vector<16x128xf32>
    %19 = vector.broadcast %1 : vector<1x128xf32> to vector<16x128xf32>
    %20 = arith.mulf %18, %19 : vector<16x128xf32>
    %21 = vector.broadcast %2 : vector<1x128xf32> to vector<16x128xf32>
    %22 = arith.addf %20, %21 : vector<16x128xf32>
    %c0_9 = arith.constant 0 : index
    %c0_10 = arith.constant 0 : index
    %23 = vector.load %arg4[%c0_9, %c0_10] : memref<128x384xf32, #tpu.memory_space<vmem>>, vector<128x384xf32>
    %cst_11 = arith.constant dense<0.000000e+00> : vector<16x384xf32>
    %24 = tpu.matmul %22, %23, %cst_11 {dimension_numbers = #tpu.dot_dimension_numbers<[1], [0], [0], [1], [0, 0, 1, 1], [], []>} : vector<16x128xf32>, vector<128x384xf32>, vector<16x384xf32> -> vector<16x384xf32>
    %c0_12 = arith.constant 0 : index
    %c0_13 = arith.constant 0 : index
    %25 = vector.load %arg5[%c0_12, %c0_13] : memref<1x384xf32, #tpu.memory_space<vmem>>, vector<1x384xf32>
    %26 = vector.broadcast %25 : vector<1x384xf32> to vector<16x384xf32>
    %27 = arith.addf %24, %26 : vector<16x384xf32>
    %28 = vector.extract_strided_slice %27 {offsets = [0, 0], sizes = [16, 128], strides = [1, 1]} : vector<16x384xf32> to vector<16x128xf32>
    %c0_14 = arith.constant 0 : index
    %c0_15 = arith.constant 0 : index
    %29 = vector.load %arg6[%c0_14, %c0_15] : memref<16x128xf32, #tpu.memory_space<vmem>>, vector<16x128xf32>
    tpu.vector_store %arg6[%c0_14, %c0_15], %28 {strides = array<i32>} : memref<16x128xf32, #tpu.memory_space<vmem>>, vector<16x128xf32>,
    %30 = vector.extract_strided_slice %27 {offsets = [0, 128], sizes = [16, 128], strides = [1, 1]} : vector<16x384xf32> to vector<16x128xf32>
    %c0_16 = arith.constant 0 : index
    %c0_17 = arith.constant 0 : index
    %31 = vector.load %arg7[%c0_16, %c0_17] : memref<16x128xf32, #tpu.memory_space<vmem>>, vector<16x128xf32>
    tpu.vector_store %arg7[%c0_16, %c0_17], %30 {strides = array<i32>} : memref<16x128xf32, #tpu.memory_space<vmem>>, vector<16x128xf32>,
    %32 = vector.extract_strided_slice %27 {offsets = [0, 256], sizes = [16, 128], strides = [1, 1]} : vector<16x384xf32> to vector<16x128xf32>
    %c0_18 = arith.constant 0 : index
    %c0_19 = arith.constant 0 : index
    %33 = vector.load %arg8[%c0_18, %c0_19] : memref<16x128xf32, #tpu.memory_space<vmem>>, vector<16x128xf32>
    tpu.vector_store %arg8[%c0_18, %c0_19], %32 {strides = array<i32>} : memref<16x128xf32, #tpu.memory_space<vmem>>, vector<16x128xf32>,
    return
  }
  func.func @transform_0(%arg0: i32) -> (i32, i32) {
    %c0_i32 = arith.constant 0 : i32
    %c0_i32_0 = arith.constant 0 : i32
    return %arg0, %c0_i32 : i32, i32
  }
  func.func @transform_1(%arg0: i32) -> (i32, i32) {
    %c0_i32 = arith.constant 0 : i32
    %c0_i32_0 = arith.constant 0 : i32
    %c0_i32_1 = arith.constant 0 : i32
    return %c0_i32, %c0_i32_0 : i32, i32
  }
  func.func @transform_2(%arg0: i32) -> (i32, i32) {
    %c0_i32 = arith.constant 0 : i32
    %c0_i32_0 = arith.constant 0 : i32
    %c0_i32_1 = arith.constant 0 : i32
    return %c0_i32, %c0_i32_0 : i32, i32
  }
  func.func @transform_3(%arg0: i32) -> (i32, i32) {
    %c0_i32 = arith.constant 0 : i32
    %c0_i32_0 = arith.constant 0 : i32
    %c0_i32_1 = arith.constant 0 : i32
    return %c0_i32, %c0_i32_0 : i32, i32
  }
  func.func @transform_4(%arg0: i32) -> (i32, i32) {
    %c0_i32 = arith.constant 0 : i32
    %c0_i32_0 = arith.constant 0 : i32
    %c0_i32_1 = arith.constant 0 : i32
    return %c0_i32, %c0_i32_0 : i32, i32
  }
  func.func @transform_5(%arg0: i32) -> (i32, i32) {
    %c0_i32 = arith.constant 0 : i32
    %c0_i32_0 = arith.constant 0 : i32
    return %arg0, %c0_i32 : i32, i32
  }
  func.func @transform_6(%arg0: i32) -> (i32, i32) {
    %c0_i32 = arith.constant 0 : i32
    %c0_i32_0 = arith.constant 0 : i32
    return %arg0, %c0_i32 : i32, i32
  }
  func.func @transform_7(%arg0: i32) -> (i32, i32) {
    %c0_i32 = arith.constant 0 : i32
    %c0_i32_0 = arith.constant 0 : i32
    return %arg0, %c0_i32 : i32, i32
  }
}

</mosaic_0001>

<bundles_post_ra>
// kernel: tpu_custom_call.1
= control target key start
LH: loop header
LB: loop body
LE: loop exit
PB: predicated region body
PF: predicated region fallthrough
CT: control target
= control target key end

     0   :  { %s1503_s0 = inlined_call_operand.hbm [shape: f32[32,128], index: 0, kind: input, shape index: {}]   ;;  %s1504_s1 = inlined_call_operand.hbm [shape: f32[1,128], index: 1, kind: input, shape index: {}]   ;;  %s1505_s2 = inlined_call_operand.hbm [shape: f32[1,128], index: 2, kind: input, shape index: {}]   ;;  %s1506_s3 = inlined_call_operand.hbm [shape: f32[128,384], index: 3, kind: input, shape index: {}]   ;;  %s1507_s4 = inlined_call_operand.vmem [shape: f32[1,384], index: 4, kind: input, shape index: {}]   ;;  %s1508_s5 = inlined_call_operand.hbm [shape: f32[32,128], index: 5, kind: output, shape index: {0}]   ;;  %s1509_s6 = inlined_call_operand.hbm [shape: f32[32,128], index: 6, kind: output, shape index: {1}]   ;;  %s1510_s7 = inlined_call_operand.hbm [shape: f32[32,128], index: 7, kind: output, shape index: {2}]  }
   0x1   :  { %1512 = sst [smem:[#allocation20_spill]] %s1503_s0 }
   0x2   :  { %1513 = sst [smem:[#allocation21_spill]] %s1504_s1 }
   0x3   :  { %1514 = sst [smem:[#allocation22_spill]] %s1505_s2 }
   0x4   :  { %1515 = sst [smem:[#allocation23_spill]] %s1506_s3 }
   0x5   :  { %1516 = sst [smem:[#allocation24_spill]] %s1507_s4 }
   0x6   :  { %13 = vsyncpa [#allocation3], 0 }
   0x7   :  { %15 = vsyncpa [#allocation3 + $0x1], 0 }
   0x8   :  { %16 = vsyncpa [#allocation6], 0 }
   0x9   :  { %17 = vsyncpa [#allocation9], 0 }
   0xa   :  { %18 = vsyncpa [#allocation4], 0 }
   0xb   :  { %20 = vsyncpa [#allocation4 + $0x1], 0 }
   0xc   :  { %21 = vsyncpa [#allocation12], 0 }
   0xd   :  { %23 = vsyncpa [#allocation12 + $0x1], 0  ;;  %s1240_s24 = smov 0   ;;  %s1242_s25 = smov 0  }
   0xe   :  { %s1244_s26 = smov 0   ;;  %s1246_s27 = smov 0  }
   0xf LB: > { %s1261_s28 = sadd.s32 4294967295, %s1188_s27   ;;  %s1511_s29 = sadd.s32 4294967294, %s1188_s27   ;;  %s1188_s27 = sphi %s1246_s27, %s1535_s27   ;;  %s1184_s26 = sphi %s1244_s26, %s1534_s26   ;;  %s1180_s25 = sphi %s1242_s25, %s1533_s25   ;;  %s1176_s24 = sphi %s1240_s24, %s1532_s24  }
  0x10   : > { %p49_p0 = scmp.ne.s32.totalorder %s1180_s25, %s1176_s24  ;;  %p50_p1 = scmp.eq.s32.totalorder %s1261_s28, 0 }
  0x11   : > { %p157_p2 = scmp.eq.s32.totalorder %s1261_s28, 1  ;;  %p163_p3 = scmp.eq.s32.totalorder %s1511_s29, 1 }
  0x12   : > { %p1272_p4 = por %p50_p1, %p49_p0  ;;  %p785_p5 = scmp.ge.s32.totalorder %s1188_s27, 1 }
  0x13   : > { %p1277_p6 = por %p163_p3, %p49_p0  ;;  %p222_p7 = scmp.lt.s32.totalorder %s1188_s27, 3 }
  0x14   : > { %s1519_s1 = sld [smem:[#allocation21_spill]]  ;;  %s1190_s13 = smov [#allocation5]  }
  0x15   : > { %p1285_p8 = pnand %p785_p5, %p222_p7  ;;  %s236_s14 = sshll.u32 %s1190_s13, 4  ;;  %s237_s14 = int_to_ptr.vmem [resolvable:$true] %s236_s14 }
  0x16   : > { %s1521_s2 = sld [smem:[#allocation22_spill]]  ;;  %s1191_s22 = smov [#allocation7]  }
  0x17   : > { %p852_p10 = pneg %p1285_p8  ;;  %s1523_s3 = sld [smem:[#allocation23_spill]] }
  0x18   : > { %s248_s23 = sshll.u32 %s1191_s22, 4  ;;  %s1192_s9 = smov [#allocation8]   ;;  %s249_s23 = int_to_ptr.vmem [resolvable:$true] %s248_s23 }
  0x19   : > { %p1297_p11 = pnand %p852_p10, %p50_p1  ;;  %s259_s10 = sshll.u32 %s1192_s9, 4  ;;  %s260_s10 = int_to_ptr.vmem [resolvable:$true] %s259_s10 }
  0x1a   : > { %s234_s11 = sshll.u32 %s1519_s1, 4  ;;  %s1193_s13 = smov 384   ;;  %s235_s11 = int_to_ptr.hbm [resolvable:$true] %s234_s11 }
  0x1b   : > { %855 = dma.hbm_to_vmem [thread:$0]  (!%p1297_p11), %s235_s11, 16, %s237_s14, [#allocation6]  }
  0x1c   : > { %s246_s17 = sshll.u32 %s1521_s2, 4  ;;  %s1194_s15 = smov 24   ;;  %s247_s17 = int_to_ptr.hbm [resolvable:$true] %s246_s17 }
  0x1d   : > { %s257_s21 = sshll.u32 %s1523_s3, 4  ;;  %s1311_s16 = sadd.s32 1, %s1188_s27   ;;  %s258_s21 = int_to_ptr.hbm [resolvable:$true] %s257_s21 }
  0x1e   : > { %858 = dma.hbm_to_vmem [thread:$0]  (!%p1297_p11), %s247_s17, 16, %s249_s23, [#allocation6]  }
  0x1f   : > { %861 = dma.hbm_to_vmem [thread:$0]  (!%p1297_p11), %s258_s21, 6144, %s260_s10, [#allocation9], %s1193_s13, %s1193_s13, %s1194_s15  }
  0x20   : > { %s33_s11 = ssub.s32 %s1188_s27, %s1311_s16  ;;  %s36_s14 = sadd.s32 1, %s1184_s26 }
  0x21   : > { %p34_p12 = scmp.eq.s32.totalorder %s33_s11, 0  ;;  %p43_p13 = scmp.ne.s32.totalorder %s1184_s26, %s1180_s25 }
  0x22   : > { %p44_p0 = scmp.eq.s32.totalorder %s1188_s27, 0  ;;  %p879_p3 = scmp.lt.s32.totalorder %s1188_s27, 2 }
  0x23   : > { %s1321_s17 = scalar_select %p34_p12, %s1184_s26, %s36_s14  }
  0x24   : > { %p45_p5 = por %p44_p0, %p43_p13  ;;  %p1325_p7 = por %p157_p2, %p43_p13 }
  0x25   : > { %1524 = sst [smem:[#allocation19_spill]] %s1321_s17  ;;  %s276_s18 = sand.u32 1, %s1184_s26  }
  0x26   : > { %s812_s20 = sshll.u32 %s1188_s27, 4  ;;  %s790_s21 = sshll.u32 %s276_s18, 4 }
  0x27   : > { %s1526_s0 = sld [smem:[#allocation20_spill]]  ;;  %s280_s13 = scalar_lea.vmem [#allocation2], %s790_s21 }
  0x28   : > { %s288_s15 = sshll.u32 %s280_s13, 4  ;;  %p1336_p10 = pnand %p879_p3, %p45_p5  ;;  %s289_s15 = int_to_ptr.vmem [resolvable:$true] %s288_s15 }
  0x29   : > { %s277_s14 = scalar_lea.sflag [#allocation3], %s276_s18 }
  0x2a   : > { %p1028_p11 = pneg %p1336_p10 }
  0x2d   : > { %s285_s9 = scalar_lea.hbm %s1526_s0, %s812_s20  ;;  %s1031_s22 = scalar_lea.hbm %s1526_s0, 32 }
  0x2e   : > { %s286_s10 = sshll.u32 %s285_s9, 4  ;;  %s287_s10 = int_to_ptr.hbm [resolvable:$true] %s286_s10 }
  0x2f   : > { %s1024_s29 = sshra.s32 %s287_s10, 4  ;;  %s1025_s29 = int_to_ptr.hbm [resolvable:$true] %s1024_s29 }
  0x30   : > { %s1026_s1 = scalar_lea.hbm %s1025_s29, 16  ;;  %p1032_p0 = scmp.lt.s32.totalorder %s1025_s29, %s1526_s0 }
  0x31   : > { %p1027_p2 = scmp.ne.s32.totalorder %s1025_s29, %s1026_s1  ;;  %p1033_p3 = scmp.lt.s32.totalorder %s1031_s22, %s1026_s1 }
  0x33   : > { %p1029_p12 = pnand %p1028_p11, %p1027_p2  ;;  %p1034_p5 = por %p1033_p3, %p1032_p0 }
  0x35   : > { %p1030_p13 = pneg %p1029_p12 }
  0x37   : > { %p1035_p9 = pnand %p1034_p5, %p1030_p13 }
  0x39   : > { %1038 = shalt.err (!%p1035_p9)
}
  0x3a   : > { %s1195_s18 = smov 128   ;;  %s1196_s13 = smov 8  }
  0x3b   : > { %865 = dma.hbm_to_vmem [thread:$0]  (!%p1336_p10), %s287_s10, 256, %s289_s15, %s277_s14, %s1195_s18, %s1195_s18, %s1196_s13  }
  0x3c   : > { %300 = sbr.rel (%p1285_p8) target bundleno = 503 (0x1f7), region = 40  ;;  %s1353_s20 = sand.u32 (!%p1285_p8), 1, %s1180_s25  }
  0x3d   : > { %s1356_s21 = sshll.u32 (!%p1285_p8), %s1353_s20, 4  ;;  %s303_s1 = scalar_lea.sflag (!%p1285_p8), [#allocation3], %s1353_s20 }
  0x3e   : > { %s306_s29 = scalar_lea.vmem (!%p1285_p8), [#allocation2], %s1356_s21 }
  0x41   : > { %1155 = dma.done.wait (%p1272_p4), %s303_s1, 256  }
  0x42   : > { %1157 = vsyncadd (%p1272_p4), %s303_s1, 4294967040 }
  0x43   : > { %1159 = dma.done.wait (%p50_p1), [#allocation6], 32  }
  0x44   : > { %1161 = vsyncadd (%p50_p1), [#allocation6], 4294967264 }
  0x45   : > { %1163 = dma.done.wait (%p50_p1), [#allocation9], 6144  }
  0x46   : > { %1165 = vsyncadd (%p50_p1), [#allocation9], 4294961152  ;;  %v367_v0 = vld [vmem:[%s306_s29] sm:$0xff]  ;;  %v368_v1 = vld [vmem:[%s306_s29 + $0x8] sm:$0xff]  ;;  %v1197_v2 = vmov 128.0   ;;  %s1528_s4 = sld [smem:[#allocation24_spill]] }
  0x47   : > { %371 = vadd.xlane.f32.xlu0 %v367_v0  ;;  %928 = vrcp.f32 %v1197_v2  ;;  %v473_v5 = vld [vmem:[#allocation8 + $0x168] sm:$0xff]  ;;  %v474_v6 = vld [vmem:[#allocation8 + $0x170] sm:$0xff]  ;;  %v475_v7 = vld [vmem:[#allocation8 + $0x178] sm:$0xff]  ;;  %s1392_s10 = sshll.u32 %s1261_s28, 4  ;;  %s1395_s15 = scalar_lea.vmem [#allocation10], %s1356_s21 }
  0x48   : > { %484 = vmatpush.msra.mxu0 %v473_v5  ;;  %507 = vmatpush.msra.mxu1 %v474_v6  ;;  %v470_v8 = vld [vmem:[#allocation8 + $0x150] sm:$0xff]  ;;  %v471_v9 = vld [vmem:[#allocation8 + $0x158] sm:$0xff]  ;;  %v472_v10 = vld [vmem:[#allocation8 + $0x160] sm:$0xff]  ;;  %s598_s22 = scalar_lea.hbm %s1509_s6, %s1392_s10  ;;  %s355_s23 = scalar_lea.vmem [#allocation11], %s1356_s21 }
  0x49   : > { %530 = vmatpush.msra.mxu2 %v475_v7  ;;  %816 = vmatpush.msra.mxu3 %v473_v5  ;;  %v467_v23 = vld [vmem:[#allocation8 + $0x138] sm:$0xff]  ;;  %v468_v24 = vld [vmem:[#allocation8 + $0x140] sm:$0xff]  ;;  %v469_v25 = vld [vmem:[#allocation8 + $0x148] sm:$0xff]  ;;  %s599_s9 = sshll.u32 %s355_s23, 4  ;;  %s564_s18 = sand.u32 1, %s1261_s28   ;;  %s1406_s9 = int_to_ptr.vmem [resolvable:$true] %s599_s9 }
  0x4a   : > { %485 = vmatpush.msra.mxu0 %v470_v8  ;;  %508 = vmatpush.msra.mxu1 %v471_v9  ;;  %v464_v26 = vld [vmem:[#allocation8 + $0x120] sm:$0xff]  ;;  %v465_v27 = vld [vmem:[#allocation8 + $0x128] sm:$0xff]  ;;  %v466_v28 = vld [vmem:[#allocation8 + $0x130] sm:$0xff]  ;;  %s1404_s13 = sshll.u32 %s598_s22, 4  ;;  %s1410_s1 = scalar_lea.vmem [#allocation13], %s1356_s21  ;;  %s602_s13 = int_to_ptr.hbm [resolvable:$true] %s1404_s13 }
  0x4b   : > { %531 = vmatpush.msra.mxu2 %v472_v10  ;;  %817 = vmatpush.msra.mxu3 %v470_v8  ;;  %v461_v29 = vld [vmem:[#allocation8 + $0x108] sm:$0xff]  ;;  %v462_v30 = vld [vmem:[#allocation8 + $0x110] sm:$0xff]  ;;  %v463_v31 = vld [vmem:[#allocation8 + $0x118] sm:$0xff]  ;;  %s581_s12 = scalar_lea.hbm %s1508_s5, %s1392_s10  ;;  %s582_s28 = sshll.u32 %s1395_s15, 4  ;;  %s583_s28 = int_to_ptr.vmem [resolvable:$true] %s582_s28 }
  0x4c   : > { %486 = vmatpush.msra.mxu0 %v467_v23  ;;  %509 = vmatpush.msra.mxu1 %v468_v24  ;;  %v458_v32 = vld [vmem:[#allocation8 + $0xf0] sm:$0xff]  ;;  %v459_v33 = vld [vmem:[#allocation8 + $0xf8] sm:$0xff]  ;;  %v460_v34 = vld [vmem:[#allocation8 + $0x100] sm:$0xff]  ;;  %s615_s22 = scalar_lea.hbm %s1510_s7, %s1392_s10  ;;  %s1422_s0 = scalar_lea.sflag [#allocation12], %s564_s18 }
  0x4d   : > { %v929_v3 = vpop.eup %928  ;;  %532 = vmatpush.msra.mxu2 %v469_v25  ;;  %818 = vmatpush.msra.mxu3 %v467_v23  ;;  %v455_v35 = vld [vmem:[#allocation8 + $0xd8] sm:$0xff]  ;;  %v456_v36 = vld [vmem:[#allocation8 + $0xe0] sm:$0xff]  ;;  %v457_v37 = vld [vmem:[#allocation8 + $0xe8] sm:$0xff]  ;;  %s1068_s2 = sshra.s32 %s602_s13, 4  ;;  %s1074_s29 = scalar_lea.hbm %s1509_s6, 32  ;;  %s1069_s2 = int_to_ptr.hbm [resolvable:$true] %s1068_s2 }
  0x4e   : > { %v376_v4 = vmul.f32 128.0, %v929_v3  ;;  %vm380_vm0 = vweird.f32 %v929_v3  ;;  %487 = vmatpush.msra.mxu0 %v464_v26  ;;  %510 = vmatpush.msra.mxu1 %v465_v27  ;;  %v452_v38 = vld [vmem:[#allocation8 + $0xc0] sm:$0xff]  ;;  %v453_v39 = vld [vmem:[#allocation8 + $0xc8] sm:$0xff]  ;;  %v454_v40 = vld [vmem:[#allocation8 + $0xd0] sm:$0xff]  ;;  %s1070_s3 = scalar_lea.hbm %s1069_s2, 16  ;;  %p1075_p9 = scmp.lt.s32.totalorder %s1069_s2, %s1509_s6 }
  0x4f   : > { %373 = vadd.xlane.f32.xlu0 %v368_v1  ;;  %533 = vmatpush.msra.mxu2 %v466_v28  ;;  %v449_v41 = vld [vmem:[#allocation8 + $0xa8] sm:$0xff]  ;;  %v450_v42 = vld [vmem:[#allocation8 + $0xb0] sm:$0xff]  ;;  %v451_v43 = vld [vmem:[#allocation8 + $0xb8] sm:$0xff]  ;;  %p1071_p1 = scmp.ne.s32.totalorder %s1069_s2, %s1070_s3  ;;  %p1076_p10 = scmp.lt.s32.totalorder %s1074_s29, %s1070_s3 }
  0x50   : > { %v377_v11 = vsub.f32 1.0, %v376_v4  ;;  %819 = vmatpush.msra.mxu3 %v464_v26  ;;  %488 = vmatpush.msra.mxu0 %v461_v29  ;;  %v446_v44 = vld [vmem:[#allocation8 + $0x90] sm:$0xff]  ;;  %v447_v45 = vld [vmem:[#allocation8 + $0x98] sm:$0xff]  ;;  %v448_v46 = vld [vmem:[#allocation8 + $0xa0] sm:$0xff] }
  0x51   : > { %511 = vmatpush.msra.mxu1 %v462_v30  ;;  %534 = vmatpush.msra.mxu2 %v463_v31  ;;  %v443_v47 = vld [vmem:[#allocation8 + $0x78] sm:$0xff]  ;;  %v444_v48 = vld [vmem:[#allocation8 + $0x80] sm:$0xff]  ;;  %v445_v49 = vld [vmem:[#allocation8 + $0x88] sm:$0xff]  ;;  %p1072_p4 = pnand %p1071_p1, %p1325_p7  ;;  %p1077_p2 = por %p1076_p10, %p1075_p9 }
  0x52   : > { %v378_v12 = vmul.f32 %v929_v3, %v377_v11  ;;  %820 = vmatpush.msra.mxu3 %v461_v29  ;;  %489 = vmatpush.msra.mxu0 %v458_v32  ;;  %v440_v50 = vld [vmem:[#allocation8 + $0x60] sm:$0xff]  ;;  %v441_v51 = vld [vmem:[#allocation8 + $0x68] sm:$0xff]  ;;  %v442_v52 = vld [vmem:[#allocation8 + $0x70] sm:$0xff] }
  0x53   : > { %512 = vmatpush.msra.mxu1 %v459_v33  ;;  %535 = vmatpush.msra.mxu2 %v460_v34  ;;  %v437_v53 = vld [vmem:[#allocation8 + $0x48] sm:$0xff]  ;;  %v438_v54 = vld [vmem:[#allocation8 + $0x50] sm:$0xff]  ;;  %v439_v55 = vld [vmem:[#allocation8 + $0x58] sm:$0xff]  ;;  %p1073_p8 = pneg %p1072_p4 }
  0x54   : > { %v379_v13 = vadd.f32 %v929_v3, %v378_v12  ;;  %821 = vmatpush.msra.mxu3 %v458_v32  ;;  %490 = vmatpush.msra.mxu0 %v455_v35  ;;  %v434_v56 = vld [vmem:[#allocation8 + $0x30] sm:$0xff]  ;;  %v435_v57 = vld [vmem:[#allocation8 + $0x38] sm:$0xff]  ;;  %v436_v58 = vld [vmem:[#allocation8 + $0x40] sm:$0xff] }
  0x55   : > { %513 = vmatpush.msra.mxu1 %v456_v36  ;;  %536 = vmatpush.msra.mxu2 %v457_v37  ;;  %v431_v59 = vld [vmem:[#allocation8 + $0x18] sm:$0xff]  ;;  %v432_v60 = vld [vmem:[#allocation8 + $0x20] sm:$0xff]  ;;  %v433_v61 = vld [vmem:[#allocation8 + $0x28] sm:$0xff]  ;;  %p1078_p11 = pnand %p1077_p2, %p1073_p8 }
  0x56   : > { %v1372_v14 = vsel %vm380_vm0, %v929_v3, %v379_v13  ;;  %822 = vmatpush.msra.mxu3 %v455_v35  ;;  %491 = vmatpush.msra.mxu0 %v452_v38  ;;  %v428_v62 = vld [vmem:[#allocation8] sm:$0xff]  ;;  %v429_v63 = vld [vmem:[#allocation8 + $0x8] sm:$0xff]  ;;  %v476_v30 = vld [vmem:[%s1528_s4] sm:$0x7] }
  0x57   : > { %514 = vmatpush.msra.mxu1 %v453_v39  ;;  %537 = vmatpush.msra.mxu2 %v454_v40  ;;  %v478_v31 = vperm.slane %v476_v30, 0  ;;  %v479_v32 = vperm.slane %v476_v30, 1  ;;  %v480_v36 = vperm.slane %v476_v30, 2 }
  0x58   : > { %823 = vmatpush.msra.mxu3 %v452_v38  ;;  %492 = vmatpush.msra.mxu0 %v449_v41 }
  0x59   : > { %515 = vmatpush.msra.mxu1 %v450_v42  ;;  %538 = vmatpush.msra.mxu2 %v451_v43 }
  0x5a   : > { %824 = vmatpush.msra.mxu3 %v449_v41  ;;  %493 = vmatpush.msra.mxu0 %v446_v44 }
  0x5b   : > { %516 = vmatpush.msra.mxu1 %v447_v45  ;;  %539 = vmatpush.msra.mxu2 %v448_v46 }
  0x5c   : > { %825 = vmatpush.msra.mxu3 %v446_v44  ;;  %494 = vmatpush.msra.mxu0 %v443_v47 }
  0x5d   : > { %517 = vmatpush.msra.mxu1 %v444_v48  ;;  %540 = vmatpush.msra.mxu2 %v445_v49 }
  0x5e   : > { %826 = vmatpush.msra.mxu3 %v443_v47  ;;  %495 = vmatpush.msra.mxu0 %v440_v50 }
  0x5f   : > { %518 = vmatpush.msra.mxu1 %v441_v51  ;;  %541 = vmatpush.msra.mxu2 %v442_v52 }
  0x60   : > { %827 = vmatpush.msra.mxu3 %v440_v50  ;;  %496 = vmatpush.msra.mxu0 %v437_v53 }
  0x61   : > { %519 = vmatpush.msra.mxu1 %v438_v54  ;;  %542 = vmatpush.msra.mxu2 %v439_v55 }
  0x62   : > { %828 = vmatpush.msra.mxu3 %v437_v53  ;;  %497 = vmatpush.msra.mxu0 %v434_v56 }
  0x63   : > { %520 = vmatpush.msra.mxu1 %v435_v57  ;;  %543 = vmatpush.msra.mxu2 %v436_v58 }
  0x64   : > { %829 = vmatpush.msra.mxu3 %v434_v56  ;;  %498 = vmatpush.msra.mxu0 %v431_v59 }
  0x65   : > { %521 = vmatpush.msra.mxu1 %v432_v60  ;;  %544 = vmatpush.msra.mxu2 %v433_v61 }
  0x66   : > { %830 = vmatpush.msra.mxu3 %v431_v59  ;;  %499 = vmatpush.msra.mxu0 %v428_v62 }
  0x67   : > { %522 = vmatpush.msra.mxu1 %v429_v63 }
  0x68   : > { %831 = vmatpush.msra.mxu3 %v428_v62 }
  0xba   : > { %v372_v15 = vpop.xlane.xlu0 %371 }
  0xbb   : > { %v382_v16 = vmul.f32 %v1372_v14, %v372_v15 }
  0xbd   : > { %v1375_v17 = vsub.f32 %v367_v0, %v382_v16  ;;  %v430_v0 = vld [vmem:[#allocation8 + $0x10] sm:$0xff]  ;;  %v926_v16 = vld [vmem:[#allocation5] ss:$0 sm:$0xff] }
  0xbe   : > { %545 = vmatpush.msra.mxu2 %v430_v0 }
  0xbf   : > { %v386_v18 = vmul.f32 %v1375_v17, %v1375_v17 }
  0xc1   : > { %388 = vadd.xlane.f32.xlu1 %v386_v18 }
  0xc2   : > { %v374_v19 = vpop.xlane.xlu0 %373 }
  0xc3   : > { %v383_v20 = vmul.f32 %v1372_v14, %v374_v19 }
  0xc5   : > { %v1380_v21 = vsub.f32 %v368_v1, %v383_v20 }
  0xc7   : > { %v387_v22 = vmul.f32 %v1380_v21, %v1380_v21 }
  0xc9   : > { %390 = vadd.xlane.f32.xlu1 %v387_v22  ;;  %v927_v22 = vld [vmem:[#allocation7] ss:$0 sm:$0xff] }
 0x134   : > { %v389_v1 = vpop.xlane.xlu1 %388 }
 0x135   : > { %v392_v2 = vmul.f32 %v389_v1, %v1372_v14 }
 0x137   : > { %v394_v3 = vadd.f32 1e-05, %v392_v2 }
 0x139   : > { %930 = vrsqrt.f32 %v394_v3  ;;  %vm402_vm2 = vweird.f32 %v394_v3 }
 0x13c   : > { %v391_v4 = vpop.xlane.xlu1 %390 }
 0x13d   : > { %v393_v5 = vmul.f32 %v391_v4, %v1372_v14 }
 0x13f   : > { %v931_v6 = vpop.eup %930  ;;  %v395_v7 = vadd.f32 1e-05, %v393_v5 }
 0x140   : > { %v397_v8 = vmul.f32 %v931_v6, %v394_v3  ;;  %vm403_vm1 = vweird.f32 %v931_v6 }
 0x141   : > { %932 = vrsqrt.f32 %v395_v7  ;;  %vm404_vm3 = vmor %vm402_vm2, %vm403_vm1  ;;  %vm412_vm5 = vweird.f32 %v395_v7 }
 0x142   : > { %v398_v9 = vmul.f32 %v931_v6, %v397_v8 }
 0x144   : > { %v399_v10 = vmul.f32 0.5, %v398_v9 }
 0x146   : > { %v400_v11 = vsub.f32 1.5, %v399_v10 }
 0x147   : > { %v933_v12 = vpop.eup %932 }
 0x148   : > { %v401_v13 = vmul.f32 %v931_v6, %v400_v11  ;;  %v407_v15 = vmul.f32 %v933_v12, %v395_v7  ;;  %vm413_vm4 = vweird.f32 %v933_v12 }
 0x149   : > { %vm414_vm6 = vmor %vm412_vm5, %vm413_vm4 }
 0x14a   : > { %v405_v18 = vsel %vm404_vm3, %v931_v6, %v401_v13  ;;  %v408_v19 = vmul.f32 %v933_v12, %v407_v15 }
 0x14b   : > { %v416_v20 = vmul.f32 %v405_v18, %v1375_v17 }
 0x14c   : > { %v409_v14 = vmul.f32 0.5, %v408_v19 }
 0x14d   : > { %v421_v23 = vmul.f32 %v926_v16, %v416_v20 }
 0x14e   : > { %v410_v24 = vsub.f32 1.5, %v409_v14 }
 0x14f   : > { %v426_v25 = vadd.f32 %v927_v22, %v421_v23 }
 0x150   : > { %v411_v26 = vmul.f32 %v933_v12, %v410_v24 }
 0x151   : > { %500 = vmatmul.f32.vlgmr.msra.gmra.mxu0 %v426_v25  ;;  %523 = vmatmul.f32.vlgmr.msra.gmra.mxu1 %v426_v25 }
 0x152   : > { %v415_v27 = vsel %vm414_vm6, %v933_v12, %v411_v26  ;;  %546 = vmatmul.f32.vlgmr.msra.gmra.mxu2 %v426_v25 }
 0x153   : > { %v417_v28 = vmul.f32 %v415_v27, %v1380_v21 }
 0x155   : > { %v422_v29 = vmul.f32 %v926_v16, %v417_v28 }
 0x157   : > { %v427_v17 = vadd.f32 %v927_v22, %v422_v29 }
 0x159   : > { %503 = vmatmul.f32.vlgmr.msra.gmra.mxu3 %v427_v17  ;;  %526 = vmatmul.f32.gmra.mxu1 %v427_v17 }
 0x15a   : > { %549 = vmatmul.f32.gmra.mxu2 %v427_v17 }
 0x1ce   : > { %v501_v33 = vpop.f32.mrf.mxu0  ;;  %v524_v34 = vpop.f32.mrf.mxu1 }
 0x1cf   : > { %v502_v35 = vadd.f32 %v501_v33, %v478_v31  ;;  %v525_v21 = vadd.f32 %v524_v34, %v479_v32 }
 0x1d1   : > { %553 = vst [vmem:[%s1395_s15] sm:$0xff] %v502_v35 }
 0x1d2   : > { %555 = vst [vmem:[%s355_s23] sm:$0xff] %v525_v21 }
 0x1d5   : > { %v547_v37 = vpop.f32.mrf.mxu2 }
 0x1d6   : > { %v548_v38 = vadd.f32 %v547_v37, %v480_v36  ;;  %v527_v39 = vpop.f32.mrf.mxu1 }
 0x1d7   : > { %v528_v40 = vadd.f32 %v527_v39, %v479_v32 }
 0x1d8   : > { %557 = vst [vmem:[%s1410_s1] sm:$0xff] %v548_v38 }
 0x1d9   : > { %556 = vst [vmem:[%s355_s23 + $0x8] sm:$0xff] %v528_v40 }
 0x1da   : > { %1081 = shalt.err (!%p1078_p11)
}
 0x1db   : > { %s1198_s10 = smov 128   ;;  %s1199_s23 = smov 8  }
 0x1dc   : > { %847 = dma.vmem_to_hbm [thread:$0]  (%p1325_p7), %s1406_s9, 256, %s602_s13, %s1422_s0, %s1198_s10, %s1198_s10, %s1199_s23   ;;  %v504_v41 = vpop.f32.mrf.mxu3 }
 0x1dd   : > { %s1439_s4 = sshll.u32 %s581_s12, 4  ;;  %s616_s2 = sshll.u32 %s1410_s1, 4  ;;  %v505_v42 = vadd.f32 %v504_v41, %v478_v31  ;;  %v550_v43 = vpop.f32.mrf.mxu2  ;;  %s585_s4 = int_to_ptr.hbm [resolvable:$true] %s1439_s4  ;;  %s1445_s2 = int_to_ptr.vmem [resolvable:$true] %s616_s2 }
 0x1de   : > { %s1442_s3 = sshll.u32 %s615_s22, 4  ;;  %v551_v44 = vadd.f32 %v550_v43, %v480_v36  ;;  %s560_s17 = scalar_lea.sflag [#allocation4], %s1353_s20  ;;  %s619_s3 = int_to_ptr.hbm [resolvable:$true] %s1442_s3 }
 0x1df   : > { %554 = vst [vmem:[%s1395_s15 + $0x8] sm:$0xff] %v505_v42  ;;  %s1096_s9 = sshra.s32 %s585_s4, 4  ;;  %s1102_s11 = scalar_lea.hbm %s1508_s5, 32  ;;  %s1097_s9 = int_to_ptr.hbm [resolvable:$true] %s1096_s9 }
 0x1e0   : > { %558 = vst [vmem:[%s1410_s1 + $0x8] sm:$0xff] %v551_v44  ;;  %s1098_s18 = scalar_lea.hbm %s1097_s9, 16  ;;  %p1103_p3 = scmp.lt.s32.totalorder %s1097_s9, %s1508_s5 }
 0x1e1   : > { %p1099_p12 = scmp.ne.s32.totalorder %s1097_s9, %s1098_s18  ;;  %p1104_p5 = scmp.lt.s32.totalorder %s1102_s11, %s1098_s18 }
 0x1e3   : > { %p1100_p13 = pnand %p1099_p12, %p1325_p7  ;;  %p1105_p1 = por %p1104_p5, %p1103_p3 }
 0x1e5   : > { %p1101_p0 = pneg %p1100_p13 }
 0x1e7   : > { %p1106_p4 = pnand %p1105_p1, %p1101_p0 }
 0x1e9   : > { %1109 = shalt.err (!%p1106_p4)
}
 0x1ea   : > { %846 = dma.vmem_to_hbm [thread:$0]  (%p1325_p7), %s583_s28, 256, %s585_s4, %s560_s17, %s1198_s10, %s1198_s10, %s1199_s23  }
 0x1eb   : > { %s1124_s20 = sshra.s32 %s619_s3, 4  ;;  %s1130_s29 = scalar_lea.hbm %s1510_s7, 32  ;;  %s1125_s20 = int_to_ptr.hbm [resolvable:$true] %s1124_s20 }
 0x1ec   : > { %s1126_s15 = scalar_lea.hbm %s1125_s20, 16  ;;  %p1131_p2 = scmp.lt.s32.totalorder %s1125_s20, %s1510_s7 }
 0x1ed   : > { %p1127_p8 = scmp.ne.s32.totalorder %s1125_s20, %s1126_s15  ;;  %p1132_p11 = scmp.lt.s32.totalorder %s1130_s29, %s1126_s15 }
 0x1ef   : > { %p1128_p9 = pnand %p1127_p8, %p1325_p7  ;;  %p1133_p12 = por %p1132_p11, %p1131_p2 }
 0x1f1   : > { %p1129_p10 = pneg %p1128_p9 }
 0x1f3   : > { %p1134_p13 = pnand %p1133_p12, %p1129_p10 }
 0x1f5   : > { %1137 = shalt.err (!%p1134_p13)
}
 0x1f6   : > { %848 = dma.vmem_to_hbm [thread:$0]  (%p1325_p7), %s1445_s2, 256, %s619_s3, %s1422_s0, %s1198_s10, %s1198_s10, %s1199_s23  }
 0x1f7 PF: > { %s633_s28 = sand.u32 1, %s1176_s24   ;;  %p1529_p0 = scmp.ge.s32.totalorder %s1188_s27, 2 }
 0x1f8   : > { %s634_s4 = scalar_lea.sflag [#allocation4], %s633_s28 }
 0x1f9   : > { %p867_p3 = pnand %p1529_p0, %p1277_p6 }
 0x1fb   : > { %p868_p5 = pneg %p867_p3 }
 0x1fd   : > { %1167 = dma.done.wait (%p868_p5), %s634_s4, 256  }
 0x1fe   : > { %1169 = vsyncadd (%p868_p5), %s634_s4, 4294967040  ;;  %s1530_s19 = sadd.s32 4294967294, %s1188_s27  }
 0x1ff   : > { %s643_s17 = sand.u32 1, %s1530_s19  }
 0x200   : > { %s644_s18 = scalar_lea.sflag [#allocation12], %s643_s17 }
 0x201   : > { %1171 = dma.done.wait (%p868_p5), %s644_s18, 512  }
 0x202   : > { %1173 = vsyncadd (%p868_p5), %s644_s18, 4294966784  ;;  %s1531_s0 = sld [smem:[#allocation19_spill]]  ;;  %p26_p7 = scmp.ge.s32.totalorder %s1311_s16, 4  }
 0x203   : > { %s1532_s24 = smov %s1180_s25  ;;  %s1533_s25 = smov %s1184_s26 }
 0x204   : > { %s1535_s27 = smov %s1311_s16  ;;  %28 = sbr.rel (!%p26_p7) target bundleno = 15 (0xf), region = 129 }
 0x208   : > { %s1534_s26 = smov %s1531_s0 }
 0x209   :  { %660 = vsyncpa [#allocation3], 1 }
 0x20a   :  { %662 = vsyncpa [#allocation3 + $0x1], 1 }
 0x20b   :  { %663 = vsyncpa [#allocation6], 1 }
 0x20c   :  { %664 = vsyncpa [#allocation9], 1 }
 0x20d   :  { %665 = vsyncpa [#allocation4], 1 }
 0x20e   :  { %667 = vsyncpa [#allocation4 + $0x1], 1 }
 0x20f   :  { %668 = vsyncpa [#allocation12], 1 }
 0x210   :  { %670 = vsyncpa [#allocation12 + $0x1], 1 }

</bundles_post_ra>
